<compile_context>
chip_gen: v7x
topology: tpu7x:2x2x1
jax: 0.10.0
libtpu: 0.0.40
codegen_flags: <defaults>
</compile_context>

<pallas_src>
import numpy as np
import jax
import jax.numpy as jnp
from jax.experimental import pallas as pl
from jax.experimental.pallas import tpu as pltpu

# ---- module configuration (deterministic, synthetic) ------------------------
N_IN = 8                                   # hnet_uncond_in_size  (n in Eq. 2)
HIDDEN = 32                                # hidden width of internal MLP hnet
TARGET_SHAPES = [(4, 16), (16,), (16, 4)]  # target network weight shapes
NUM_OUTPUTS = sum(int(np.prod(s)) for s in TARGET_SHAPES)   # 144
SIGMA_NOISE = 0.02

LANE = 128
SUBLANE = 8


def _round_up(x, m):
    return ((x + m - 1) // m) * m


def _cdiv(a, b):
    return (a + b - 1) // b


HIDDEN_PAD = _round_up(HIDDEN, LANE)        # 32 -> 128
# Contraction width of the first GEMM: one lane tile (covers the n real input
# columns; the remaining rows of w1 are zero, so semantics are exact).
K1 = min(LANE, NUM_OUTPUTS)                 # 128
assert N_IN <= K1
MAX_BATCH_BLOCK = 1024                      # rows per grid step (f32)

# TODO(synk): input_handler / output_handler callbacks of HPerturbWrapper are
# arbitrary Python and are not translated; this implements the default path.


# ---- Pallas kernel: internal hnet MLP + output perturbation -----------------
def hperturb_kernel(z_ref, w1_ref, b1_ref, w2_ref, b2_ref, o_ref):
    z = z_ref[...]                  # [bm, NUM_OUTPUTS]   (natural width)
    x = z_ref[:, :K1]               # [bm, 128] static, lane-tile-aligned slice
    # internal hypernetwork: fc -> relu -> fc (flattened output).
    # w1 rows >= N_IN and columns >= HIDDEN are zero, so only z[:, :N_IN]
    # contributes and h[:, HIDDEN:] is exactly zero.
    h = jnp.dot(x, w1_ref[...], preferred_element_type=jnp.float32) + b1_ref[...]
    h = jnp.maximum(h, 0.0)
    out = jnp.dot(h, w2_ref[...], preferred_element_type=jnp.float32) + b2_ref[...]
    # output perturbation: h_theta(z_{:n}) + sigma_noise * z
    o_ref[...] = out + SIGMA_NOISE * z


def make_hperturb_forward(w1, b1, w2, b2):
    """Build the forward fn; pads hnet parameters ONCE (host-side numpy)."""
    w1 = np.asarray(w1, np.float32)
    b1 = np.asarray(b1, np.float32)
    w2 = np.asarray(w2, np.float32)
    b2 = np.asarray(b2, np.float32)

    w1_p = np.zeros((K1, HIDDEN_PAD), np.float32)
    w1_p[:N_IN, :HIDDEN] = w1
    b1_p = np.zeros((1, HIDDEN_PAD), np.float32)
    b1_p[0, :HIDDEN] = b1
    w2_p = np.zeros((HIDDEN_PAD, NUM_OUTPUTS), np.float32)
    w2_p[:HIDDEN, :] = w2
    b2_p = b2.reshape(1, NUM_OUTPUTS)

    w1_p = jnp.asarray(w1_p)
    b1_p = jnp.asarray(b1_p)
    w2_p = jnp.asarray(w2_p)
    b2_p = jnp.asarray(b2_p)

    def forward(z, ret_format="squeezed"):
        B = z.shape[0]
        assert z.shape[1] == NUM_OUTPUTS
        if z.dtype != jnp.float32:
            z = z.astype(jnp.float32)

        # ---- adaptive batch tiling ------------------------------------------
        # >= 2 grid steps whenever possible (v7x megacore), blocks capped at
        # MAX_BATCH_BLOCK rows (amortizes per-step overhead on v5e/v6e), and a
        # tight fit so the ragged tail is at most 7 rows of masked work.
        b8 = _round_up(B, SUBLANE)
        n_blocks = max(2, _cdiv(b8, MAX_BATCH_BLOCK))
        bm = _round_up(_cdiv(b8, n_blocks), SUBLANE)
        if bm >= B:
            bm = B              # single block == full array (always legal)
        grid = (_cdiv(B, bm),)

        flat = pl.pallas_call(
            hperturb_kernel,
            out_shape=jax.ShapeDtypeStruct((B, NUM_OUTPUTS), jnp.float32),
            grid=grid,
            in_specs=[
                pl.BlockSpec((bm, NUM_OUTPUTS), lambda i: (i, 0)),      # z
                pl.BlockSpec((K1, HIDDEN_PAD), lambda i: (0, 0)),       # w1_pad
                pl.BlockSpec((1, HIDDEN_PAD), lambda i: (0, 0)),        # b1_pad
                pl.BlockSpec((HIDDEN_PAD, NUM_OUTPUTS), lambda i: (0, 0)),  # w2_pad
                pl.BlockSpec((1, NUM_OUTPUTS), lambda i: (0, 0)),       # b2
            ],
            out_specs=pl.BlockSpec((bm, NUM_OUTPUTS), lambda i: (i, 0)),
            compiler_params=pltpu.CompilerParams(
                dimension_semantics=("parallel",)),
        )(z, w1_p, b1_p, w2_p, b2_p)

        if ret_format == "flattened":
            return flat

        # _flat_to_ret_format: split flattened output into the target shapes.
        outs = []
        off = 0
        for shp in TARGET_SHAPES:
            n = int(np.prod(shp))
            chunk = flat[:, off:off + n].reshape((B,) + tuple(shp))
            off += n
            if ret_format == "squeezed" and B == 1:
                chunk = chunk.reshape(tuple(shp))
            outs.append(chunk)
        return outs

    return forward


# ---- reference (plain JAX) for correctness check -----------------------------
def reference_forward(z, w1, b1, w2, b2):
    x = z[:, :N_IN]
    h = jnp.maximum(x @ w1 + b1, 0.0)
    out = h @ w2 + b2
    return out + SIGMA_NOISE * z


if __name__ == "__main__":
    key = jax.random.PRNGKey(0)
    kz, k1, k2, k3, k4 = jax.random.split(key, 5)

    B = 2
    # unconditional input z ~ p_Z(Z), dim(Z) == dim(W) == NUM_OUTPUTS
    z = jax.random.normal(kz, (B, NUM_OUTPUTS), dtype=jnp.float32)

    # deterministic internal-hnet parameters
    w1 = jax.random.normal(k1, (N_IN, HIDDEN), dtype=jnp.float32) * 0.1
    b1 = jax.random.normal(k2, (HIDDEN,), dtype=jnp.float32) * 0.1
    w2 = jax.random.normal(k3, (HIDDEN, NUM_OUTPUTS), dtype=jnp.float32) * 0.1
    b2 = jax.random.normal(k4, (NUM_OUTPUTS,), dtype=jnp.float32) * 0.1

    forward = make_hperturb_forward(w1, b1, w2, b2)
    outs = forward(z, ret_format="squeezed")
    outs = [jax.block_until_ready(o) for o in outs]

    # check against pure-JAX reference
    ref_flat = reference_forward(z, w1, b1, w2, b2)
    got_flat = jnp.concatenate([o.reshape(B, -1) for o in outs], axis=1)
    assert np.allclose(np.asarray(got_flat), np.asarray(ref_flat), atol=1e-5), \
        "mismatch vs reference"
    assert [tuple(o.shape) for o in outs] == [(B,) + s for s in TARGET_SHAPES]

    print("KERNEL_OK")
</pallas_src>

<mosaic_0001>
module attributes {stable_mosaic.version = 11 : i64} {
  func.func @hperturb_kernel(%arg0: i32, %arg1: memref<2x144xf32, #tpu.memory_space<vmem>>, %arg2: memref<128x128xf32, #tpu.memory_space<vmem>>, %arg3: memref<1x128xf32, #tpu.memory_space<vmem>>, %arg4: memref<128x144xf32, #tpu.memory_space<vmem>>, %arg5: memref<1x144xf32, #tpu.memory_space<vmem>>, %arg6: memref<2x144xf32, #tpu.memory_space<vmem>>) attributes {dimension_semantics = [#tpu.dimension_semantics<parallel>], iteration_bounds = array<i64: 1>, scalar_prefetch = 0 : i64, scratch_operands = 0 : i64, tpu.core_type = #tpu.core_type<tc>, window_params = [{transform_indices = @transform_0, window_bounds = array<i64: 2, 144>}, {pipeline_mode = #tpu.pipeline_mode<synchronous>, transform_indices = @transform_1, window_bounds = array<i64: 128, 128>}, {pipeline_mode = #tpu.pipeline_mode<synchronous>, transform_indices = @transform_2, window_bounds = array<i64: 1, 128>}, {pipeline_mode = #tpu.pipeline_mode<synchronous>, transform_indices = @transform_3, window_bounds = array<i64: 128, 144>}, {pipeline_mode = #tpu.pipeline_mode<synchronous>, transform_indices = @transform_4, window_bounds = array<i64: 1, 144>}, {transform_indices = @transform_5, window_bounds = array<i64: 2, 144>}]} {
    %c0 = arith.constant 0 : index
    %c0_0 = arith.constant 0 : index
    %0 = vector.load %arg1[%c0, %c0_0] : memref<2x144xf32, #tpu.memory_space<vmem>>, vector<2x144xf32>
    %c0_1 = arith.constant 0 : index
    %c0_2 = arith.constant 0 : index
    %1 = vector.load %arg1[%c0_1, %c0_2] : memref<2x144xf32, #tpu.memory_space<vmem>>, vector<2x128xf32>
    %c0_3 = arith.constant 0 : index
    %c0_4 = arith.constant 0 : index
    %2 = vector.load %arg2[%c0_3, %c0_4] : memref<128x128xf32, #tpu.memory_space<vmem>>, vector<128x128xf32>
    %cst = arith.constant dense<0.000000e+00> : vector<2x128xf32>
    %3 = tpu.matmul %1, %2, %cst {dimension_numbers = #tpu.dot_dimension_numbers<[1], [0], [0], [1], [0, 0, 1, 1], [], []>} : vector<2x128xf32>, vector<128x128xf32>, vector<2x128xf32> -> vector<2x128xf32>
    %c0_5 = arith.constant 0 : index
    %c0_6 = arith.constant 0 : index
    %4 = vector.load %arg3[%c0_5, %c0_6] : memref<1x128xf32, #tpu.memory_space<vmem>>, vector<1x128xf32>
    %5 = vector.broadcast %4 : vector<1x128xf32> to vector<2x128xf32>
    %6 = arith.addf %3, %5 : vector<2x128xf32>
    %cst_7 = arith.constant 0.000000e+00 : f32
    %7 = vector.broadcast %cst_7 : f32 to vector<2x128xf32>
    %8 = arith.maximumf %6, %7 : vector<2x128xf32>
    %c0_8 = arith.constant 0 : index
    %c0_9 = arith.constant 0 : index
    %9 = vector.load %arg4[%c0_8, %c0_9] : memref<128x144xf32, #tpu.memory_space<vmem>>, vector<128x144xf32>
    %cst_10 = arith.constant dense<0.000000e+00> : vector<2x144xf32>
    %10 = tpu.matmul %8, %9, %cst_10 {dimension_numbers = #tpu.dot_dimension_numbers<[1], [0], [0], [1], [0, 0, 1, 1], [], []>} : vector<2x128xf32>, vector<128x144xf32>, vector<2x144xf32> -> vector<2x144xf32>
    %c0_11 = arith.constant 0 : index
    %c0_12 = arith.constant 0 : index
    %11 = vector.load %arg5[%c0_11, %c0_12] : memref<1x144xf32, #tpu.memory_space<vmem>>, vector<1x144xf32>
    %12 = vector.broadcast %11 : vector<1x144xf32> to vector<2x144xf32>
    %13 = arith.addf %10, %12 : vector<2x144xf32>
    %cst_13 = arith.constant 2.000000e-02 : f32
    %14 = vector.broadcast %cst_13 : f32 to vector<2x144xf32>
    %15 = arith.mulf %14, %0 : vector<2x144xf32>
    %16 = arith.addf %13, %15 : vector<2x144xf32>
    %c0_14 = arith.constant 0 : index
    %c0_15 = arith.constant 0 : index
    %17 = vector.load %arg6[%c0_14, %c0_15] : memref<2x144xf32, #tpu.memory_space<vmem>>, vector<2x144xf32>
    tpu.vector_store %arg6[%c0_14, %c0_15], %16 {strides = array<i32>} : memref<2x144xf32, #tpu.memory_space<vmem>>, vector<2x144xf32>,
    return
  }
  func.func @transform_0(%arg0: i32) -> (i32, i32) {
    %c0_i32 = arith.constant 0 : i32
    %c0_i32_0 = arith.constant 0 : i32
    return %arg0, %c0_i32 : i32, i32
  }
  func.func @transform_1(%arg0: i32) -> (i32, i32) {
    %c0_i32 = arith.constant 0 : i32
    %c0_i32_0 = arith.constant 0 : i32
    %c0_i32_1 = arith.constant 0 : i32
    return %c0_i32, %c0_i32_0 : i32, i32
  }
  func.func @transform_2(%arg0: i32) -> (i32, i32) {
    %c0_i32 = arith.constant 0 : i32
    %c0_i32_0 = arith.constant 0 : i32
    %c0_i32_1 = arith.constant 0 : i32
    return %c0_i32, %c0_i32_0 : i32, i32
  }
  func.func @transform_3(%arg0: i32) -> (i32, i32) {
    %c0_i32 = arith.constant 0 : i32
    %c0_i32_0 = arith.constant 0 : i32
    %c0_i32_1 = arith.constant 0 : i32
    return %c0_i32, %c0_i32_0 : i32, i32
  }
  func.func @transform_4(%arg0: i32) -> (i32, i32) {
    %c0_i32 = arith.constant 0 : i32
    %c0_i32_0 = arith.constant 0 : i32
    %c0_i32_1 = arith.constant 0 : i32
    return %c0_i32, %c0_i32_0 : i32, i32
  }
  func.func @transform_5(%arg0: i32) -> (i32, i32) {
    %c0_i32 = arith.constant 0 : i32
    %c0_i32_0 = arith.constant 0 : i32
    return %arg0, %c0_i32 : i32, i32
  }
}

</mosaic_0001>

<bundles_post_ra>
// kernel: tpu_custom_call.1
= control target key start
LH: loop header
LB: loop body
LE: loop exit
PB: predicated region body
PF: predicated region fallthrough
CT: control target
= control target key end

     0   :  { %v413_v3 = vmov 0.0|0.0   ;;  %vm414_vm0 = vmmov 0   ;;  %v415_v6 = vmov 0.0   ;;  %s624_s0 = inlined_call_operand.vmem [shape: f32[2,144], index: 0, kind: input, shape index: {}]   ;;  %s625_s1 = inlined_call_operand.vmem [shape: f32[128,128], index: 1, kind: input, shape index: {}]   ;;  %s626_s2 = inlined_call_operand.vmem [shape: f32[1,128], index: 2, kind: input, shape index: {}]   ;;  %s627_s3 = inlined_call_operand.vmem [shape: f32[128,144], index: 3, kind: input, shape index: {}]   ;;  %s628_s4 = inlined_call_operand.vmem [shape: f32[1,144], index: 4, kind: input, shape index: {}]   ;;  %s629_s5 = inlined_call_operand.hbm [shape: f32[2,144], index: 5, kind: output, shape index: {}]  }
   0x1   :  { %v23_v0 = vld [vmem:[%s625_s1] sm:$0xff]  ;;  %v24_v1 = vld [vmem:[%s625_s1 + $0x8] sm:$0xff]  ;;  %v25_v2 = vld [vmem:[%s625_s1 + $0x10] sm:$0xff]  ;;  %328 = vmatprep.subr.bf16.mxu0 %v413_v3  ;;  %325 = vmatprep.mubr.msk.f32.mxu0 %vm414_vm0, %v415_v6 }
   0x2   :  { %v329_v4 = vpack.c.bf16 %v24_v1, %v23_v0  ;;  %v26_v5 = vld [vmem:[%s625_s1 + $0x18] sm:$0xff]  ;;  %225 = vmatprep.mubr.f32.mxu1 %v415_v6  ;;  %v27_v8 = vld [vmem:[%s625_s1 + $0x20] sm:$0xff]  ;;  %v28_v9 = vld [vmem:[%s625_s1 + $0x28] sm:$0xff] }
   0x3   :  { %v332_v7 = vpack.c.bf16 %v26_v5, %v25_v2  ;;  %v118_v10 = vld [vmem:[%s627_s3 + $0x8] sm:$0xff]  ;;  %v29_v11 = vld [vmem:[%s625_s1 + $0x30] sm:$0xff]  ;;  %v30_v12 = vld [vmem:[%s625_s1 + $0x38] sm:$0xff]  ;;  %v335_v16 = vpack.c.bf16 %v28_v9, %v27_v8 }
   0x4   :  { %330 = vmatpush3.bf16.msra.mxu0 %v329_v4  ;;  %v120_v13 = vld [vmem:[%s627_s3 + $0x18] sm:$0xff]  ;;  %v117_v14 = vld [vmem:[%s627_s3] sm:$0xff]  ;;  %v119_v15 = vld [vmem:[%s627_s3 + $0x10] sm:$0xff]  ;;  %v338_v27 = vpack.c.bf16 %v30_v12, %v29_v11 }
   0x5   :  { %331 = vmatprep.subr.bf16.mxu0 %v413_v3  ;;  %v352_v17 = vpack.c.bf16 %v120_v13, %v118_v10  ;;  %v354_v18 = vpack.c.bf16 %v119_v15, %v117_v14  ;;  %v122_v19 = vld [vmem:[%s627_s3 + $0x28] sm:$0xff]  ;;  %v124_v20 = vld [vmem:[%s627_s3 + $0x38] sm:$0xff]  ;;  %v121_v21 = vld [vmem:[%s627_s3 + $0x20] sm:$0xff] }
   0x6   :  { %v356_v22 = vpack.c.bf16 %v124_v20, %v122_v19  ;;  %v123_v23 = vld [vmem:[%s627_s3 + $0x30] sm:$0xff]  ;;  %v126_v24 = vld [vmem:[%s627_s3 + $0x48] sm:$0xff]  ;;  %v128_v25 = vld [vmem:[%s627_s3 + $0x58] sm:$0xff] }
   0x7   :  { %353 = vmatprep.subr.bf16.mxu1 %v352_v17  ;;  %v358_v26 = vpack.c.bf16 %v123_v23, %v121_v21  ;;  %v31_v28 = vld [vmem:[%s625_s1 + $0x40] sm:$0xff]  ;;  %v360_v29 = vpack.c.bf16 %v128_v25, %v126_v24  ;;  %v127_v31 = vld [vmem:[%s627_s3 + $0x50] sm:$0xff]  ;;  %v32_v32 = vld [vmem:[%s625_s1 + $0x48] sm:$0xff] }
   0x8   :  { %333 = vmatpush3.bf16.msra.mxu0 %v332_v7  ;;  %355 = vmatpush1.bf16.msra.mxu1 %v354_v18  ;;  %v125_v30 = vld [vmem:[%s627_s3 + $0x40] sm:$0xff]  ;;  %v130_v33 = vld [vmem:[%s627_s3 + $0x68] sm:$0xff]  ;;  %v132_v34 = vld [vmem:[%s627_s3 + $0x78] sm:$0xff]  ;;  %v341_v37 = vpack.c.bf16 %v32_v32, %v31_v28 }
   0x9   :  { %334 = vmatprep.subr.bf16.mxu0 %v413_v3  ;;  %357 = vmatprep.subr.bf16.mxu1 %v356_v22  ;;  %v33_v35 = vld [vmem:[%s625_s1 + $0x50] sm:$0xff]  ;;  %v362_v36 = vpack.c.bf16 %v127_v31, %v125_v30  ;;  %v364_v38 = vpack.c.bf16 %v132_v34, %v130_v33  ;;  %v129_v39 = vld [vmem:[%s627_s3 + $0x60] sm:$0xff] }
   0xa   :  { %v131_v40 = vld [vmem:[%s627_s3 + $0x70] sm:$0xff] }
   0xc   :  { %336 = vmatpush3.bf16.msra.mxu0 %v335_v16  ;;  %359 = vmatpush1.bf16.msra.mxu1 %v358_v26 }
   0xd   :  { %337 = vmatprep.subr.bf16.mxu0 %v413_v3  ;;  %361 = vmatprep.subr.bf16.mxu1 %v360_v29 }
  0x10   :  { %339 = vmatpush3.bf16.msra.mxu0 %v338_v27 }
  0x11   :  { %10 = vsyncpa [#allocation3], 0  ;;  %340 = vmatprep.subr.bf16.mxu0 %v413_v3  ;;  %v34_v41 = vld [vmem:[%s625_s1 + $0x58] sm:$0xff]  ;;  %v134_v42 = vld [vmem:[%s627_s3 + $0x88] sm:$0xff]  ;;  %363 = vmatpush1.bf16.msra.mxu1 %v362_v36  ;;  %v366_v44 = vpack.c.bf16 %v131_v40, %v129_v39  ;;  %v151_v16 = vlaneseq  ;;  %v416_v17 = vmov 1983009808  }
  0x12   :  { %v136_v43 = vld [vmem:[%s627_s3 + $0x98] sm:$0xff]  ;;  %v344_v45 = vpack.c.bf16 %v34_v41, %v33_v35  ;;  %v35_v46 = vld [vmem:[%s625_s1 + $0x60] sm:$0xff]  ;;  %365 = vmatprep.subr.bf16.mxu1 %v364_v38  ;;  %v135_v49 = vld [vmem:[%s627_s3 + $0x90] sm:$0xff]  ;;  %v235_v18 = vunpack.c.l.s4 %v416_v17  ;;  %vm257_vm1 = vcmask 1041408   ;;  %vm258_vm2 = vcmask 125954  }
  0x13   :  { %v368_v47 = vpack.c.bf16 %v136_v43, %v134_v42  ;;  %v133_v48 = vld [vmem:[%s627_s3 + $0x80] sm:$0xff]  ;;  %v36_v50 = vld [vmem:[%s625_s1 + $0x68] sm:$0xff]  ;;  %v140_v52 = vld [vmem:[%s627_s3 + $0xb8] sm:$0xff]  ;;  %v152_v19 = vshrl.u32 %v151_v16, 7 }
  0x14   :  { %342 = vmatpush3.bf16.msra.mxu0 %v341_v37  ;;  %v138_v51 = vld [vmem:[%s627_s3 + $0xa8] sm:$0xff]  ;;  %v370_v53 = vpack.c.bf16 %v135_v49, %v133_v48  ;;  %v347_v54 = vpack.c.bf16 %v36_v50, %v35_v46  ;;  %v37_v55 = vld [vmem:[%s625_s1 + $0x70] sm:$0xff]  ;;  %v137_v57 = vld [vmem:[%s627_s3 + $0xa0] sm:$0xff]  ;;  %v236_v20 = vunpack.c.0.s8 %v235_v18 }
  0x15   :  { %343 = vmatprep.subr.bf16.mxu0 %v413_v3  ;;  %367 = vmatpush1.bf16.msra.mxu1 %v366_v44  ;;  %v372_v56 = vpack.c.bf16 %v140_v52, %v138_v51  ;;  %v139_v58 = vld [vmem:[%s627_s3 + $0xb0] sm:$0xff]  ;;  %v38_v59 = vld [vmem:[%s625_s1 + $0x78] sm:$0xff]  ;;  %v142_v60 = vld [vmem:[%s627_s3 + $0xc8] sm:$0xff]  ;;  %v153_v24 = vsub.s32 0, %v152_v19  ;;  %v157_v26 = vsub.s32 1, %v152_v19 }
  0x16   :  { %369 = vmatprep.subr.bf16.mxu1 %v368_v47  ;;  %v144_v61 = vld [vmem:[%s627_s3 + $0xd8] sm:$0xff]  ;;  %v374_v62 = vpack.c.bf16 %v139_v58, %v137_v57  ;;  %v350_v63 = vpack.c.bf16 %v38_v59, %v37_v55  ;;  %v141_v1 = vld [vmem:[%s627_s3 + $0xc0] sm:$0xff]  ;;  %v143_v2 = vld [vmem:[%s627_s3 + $0xd0] sm:$0xff]  ;;  %v239_v23 = vsub.s32 %v236_v20, %v152_v19 }
  0x17   :  { %v376_v0 = vpack.c.bf16 %v144_v61, %v142_v60  ;;  %v378_v4 = vpack.c.bf16 %v143_v2, %v141_v1  ;;  %v22_v5 = vld [vmem:[%s624_s0] sm:$0x3]  ;;  %v146_v6 = vld [vmem:[%s627_s3 + $0xe8] sm:$0xff]  ;;  %v148_v7 = vld [vmem:[%s627_s3 + $0xf8] sm:$0xff] }
  0x18   :  { %345 = vmatpush3.bf16.msra.mxu0 %v344_v45  ;;  %v380_v8 = vpack.c.bf16 %v148_v7, %v146_v6  ;;  %v147_v9 = vld [vmem:[%s627_s3 + $0xf0] sm:$0xff]  ;;  %v275_v11 = vld [vmem:[%s626_s2] ss:$0 sm:$0xff]  ;;  %vm259_vm3 = vmor %vm258_vm2, %vm257_vm1 }
  0x19   :  { %346 = vmatprep.subr.bf16.mxu0 %v413_v3  ;;  %371 = vmatpush1.bf16.msra.mxu1 %v370_v53  ;;  %v21_v21 = vld [vmem:[%s624_s0] sm:$0xf]  ;;  %s417_s0 = smov [#allocation2]  }
  0x1a   :  { %373 = vmatprep.subr.bf16.mxu1 %v372_v56  ;;  %v232_v22 = vmul.f32 0.02, %v21_v21  ;;  %v149_v25 = vld [vmem:[%s628_s4] sm:$0x3]  ;;  %s267_s2 = sshll.u32 %s417_s0, 4  ;;  %s268_s2 = int_to_ptr.vmem [resolvable:$true] %s267_s2 }
  0x1b   :  { %v154_v28 = vrot.slane %v149_v25, %v153_v24  ;;  %v158_v29 = vrot.slane %v149_v25, %v157_v26  ;;  %s389_s4 = scalar_lea.vmem %s268_s2, 64  ;;  %p394_p1 = scmp.lt.s32.totalorder %s268_s2, %s268_s2 }
  0x1c   :  { %348 = vmatpush3.bf16.msra.mxu0 %v347_v54  ;;  %v240_v27 = vrot.slane %v232_v22, %v239_v23  ;;  %p390_p0 = scmp.ne.s32.totalorder %s268_s2, %s389_s4  ;;  %p395_p2 = scmp.lt.s32.totalorder %s389_s4, %s389_s4 }
  0x1d   :  { %349 = vmatprep.subr.bf16.mxu0 %v413_v3  ;;  %375 = vmatpush1.bf16.msra.mxu1 %v374_v62  ;;  %v145_v3 = vld [vmem:[%s627_s3 + $0xe0] sm:$0xff] }
  0x1e   :  { %377 = vmatprep.subr.bf16.mxu1 %v376_v0  ;;  %v382_v10 = vpack.c.bf16 %v147_v9, %v145_v3  ;;  %v241_v31 = vcombine.high %v240_v27, %v240_v27  ;;  %p396_p3 = por %p395_p2, %p394_p1 }
  0x20   :  { %351 = vmatpush3.bf16.msra.mxu0 %v350_v63  ;;  %p397_p4 = pnand %p396_p3, %p390_p0 }
  0x21   :  { %379 = vmatpush1.bf16.msra.mxu1 %v378_v4 }
  0x22   :  { %381 = vmatprep.subr.bf16.mxu1 %v380_v8 }
  0x23   :  { %326 = vmatmul.mubr.f32.vlgmr.msra.gmra.mrb[0].mxu0 %v22_v5 }
  0x25   :  { %383 = vmatpush1.bf16.msra.mxu1 %v382_v10 }
  0xf6   :  { %v112_v12 = vpop.f32.mrb[0].mxu0 }
  0xf7   :  { %v113_v13 = vadd.f32 %v275_v11, %v112_v12  ;;  %v327_v14 = vpop.f32.mrb[1].mxu0 }
  0xf9   :  { %v116_v15 = vmax.f32 %v113_v13, 0.0 }
  0xfb   :  { %226 = vmatmul.mubr.f32.vlgmr.msra.gmra.mrb[0].mxu1 %v116_v15 }
 0x1ce   :  { %v227_v30 = vpop.f32.mrb[0].mxu1 }
 0x1cf   :  { %v228_v32 = vadd.f32 %v227_v30, %v154_v28  ;;  %v229_v33 = vpop.f32.mrb[1].mxu1 }
 0x1d0   :  { %v230_v34 = vadd.f32 %v229_v33, %v158_v29 }
 0x1d1   :  { %v244_v35 = vadd.f32 %v240_v27, %v228_v32 }
 0x1d2   :  { %v245_v36 = vadd.f32 %v241_v31, %v230_v34 }
 0x1d4   :  { %v248_v37 = vcombine.low %v244_v35, %v245_v36 }
 0x1d6   :  { %v255_v38 = vrot.slane %v248_v37, %v239_v23 }
 0x1d8   :  { %260 = vst.msk [vmem:[#allocation2] sm:$0xf] %vm259_vm3, %v255_v38 }
 0x1d9   :  { %400 = shalt.err (!%p397_p4)
}
 0x1da   :  { %s401_s22 = scalar_lea.hbm %s629_s5, 64 }
 0x1db   :  { %p402_p5 = scmp.ne.s32.totalorder %s629_s5, %s401_s22  ;;  %p405_p6 = scmp.lt.u32.totalorder %s401_s22, %s629_s5 }
 0x1dd   :  { %p407_p7 = pnand %p405_p6, %p402_p5 }
 0x1df   :  { %410 = shalt.err (!%p407_p7)
}
 0x1e0   :  { %270 = dma.vmem_to_hbm [thread:$0]  %s268_s2, 64, %s629_s5, [#allocation3]  }
 0x1e1   :  { %411 = dma.done.wait [#allocation3], 64  }
 0x1e2   :  { %412 = vsyncadd [#allocation3], 4294967232 }
 0x1e3   :  { %274 = vsyncpa [#allocation3], 1 }

</bundles_post_ra>
